<compile_context>
chip_gen: v5e
topology: v5e:2x2
jax: 0.10.0
libtpu: 0.0.40
codegen_flags: <defaults>
</compile_context>

<pallas_src>
import jax
import jax.numpy as jnp
from jax.experimental import pallas as pl
from jax.experimental.pallas import tpu as pltpu

C_IN = 2
C_OUT = 32


def _location_conv_kernel(x_ref, w_ref, o_ref):
    # x_ref: (1, C_IN, h_tile, w_tile)   input tile, NCHW layout
    # w_ref: (C_OUT, C_IN)               resident weight
    # o_ref: (1, h_tile, C_OUT, w_tile)  output tile, (B, H, C_OUT, W) layout
    x = x_ref[...]
    w = w_ref[...].astype(jnp.float32)

    x0 = x[0, 0].astype(jnp.float32)    # (h_tile, w_tile)
    x1 = x[0, 1].astype(jnp.float32)    # (h_tile, w_tile)

    # VPU broadcast-FMA: out[h, o, w] = x0[h, w]*w[o, 0] + x1[h, w]*w[o, 1]
    out = x0[:, None, :] * w[:, 0:1] + x1[:, None, :] * w[:, 1:2]  # (h_tile, C_OUT, w_tile)
    o_ref[0] = out.astype(o_ref.dtype)


def _pick_tiles(h, w, itemsize):
    """Choose (h_tile, w_tile): one step's (input + output) block ~2 MiB, so the
    double-buffered footprint (~4 MiB) fits every chip's default scoped-VMEM limit."""
    budget = 2 * 1024 * 1024
    sub = 8 * max(1, 4 // itemsize)            # sublane multiple for this dtype
    bytes_per_pos = (C_IN + C_OUT) * itemsize  # input + output bytes per (h, w) position

    if h * w * bytes_per_pos <= budget:
        return h, w                            # whole (H, W) plane per batch step

    per_row = w * bytes_per_pos
    if per_row * sub <= budget:                # full-W rows fit: tile H only
        t = budget // per_row
        h_tile = (t // sub) * sub
        return min(h, max(sub, h_tile)), w

    # W itself is too wide even for `sub` rows: minimum row band, tile W (mult. of 128).
    h_tile = min(h, sub)
    t = budget // (h_tile * bytes_per_pos)
    w_tile = max(128, (t // 128) * 128)
    return h_tile, min(w_tile, w)


def attention_forward(attention_weights_cat, conv_weight, *, h_tile=None, w_tile=None):
    """attention_weights_cat: (B, 2, H, W); conv_weight: (32, 2) or (32, 2, 1, 1).

    Equivalent of:
        y = F.conv2d(x, w, bias=None)   # (B, 32, H, W)  (kernel_size=1)
        y = y.transpose(1, 2)           # (B, H, 32, W)
    """
    b, c_in, h, w = attention_weights_cat.shape
    assert c_in == C_IN
    w2d = jnp.reshape(conv_weight, (C_OUT, C_IN))  # handles torch's (32, 2, 1, 1) weight

    itemsize = attention_weights_cat.dtype.itemsize
    auto_h, auto_w = _pick_tiles(h, w, itemsize)
    if h_tile is None:
        h_tile = auto_h
    if w_tile is None:
        w_tile = auto_w

    grid = (b, pl.cdiv(h, h_tile), pl.cdiv(w, w_tile))

    flops = 2 * C_IN * C_OUT * b * h * w
    bytes_accessed = (
        b * C_IN * h * w * itemsize
        + b * h * C_OUT * w * itemsize
        + C_OUT * C_IN * w2d.dtype.itemsize
    )

    return pl.pallas_call(
        _location_conv_kernel,
        out_shape=jax.ShapeDtypeStruct((b, h, C_OUT, w), attention_weights_cat.dtype),
        grid_spec=pltpu.PrefetchScalarGridSpec(
            num_scalar_prefetch=0,
            grid=grid,
            in_specs=[
                pl.BlockSpec((1, C_IN, h_tile, w_tile), lambda bi, hi, wi: (bi, 0, hi, wi)),
                pl.BlockSpec((C_OUT, C_IN), lambda bi, hi, wi: (0, 0)),
            ],
            out_specs=pl.BlockSpec((1, h_tile, C_OUT, w_tile), lambda bi, hi, wi: (bi, hi, 0, wi)),
        ),
        compiler_params=pltpu.CompilerParams(
            dimension_semantics=("parallel", "parallel", "parallel"),
        ),
        cost_estimate=pl.CostEstimate(
            flops=flops, transcendentals=0, bytes_accessed=bytes_accessed
        ),
    )(attention_weights_cat, w2d)


def _reference(x, conv_weight):
    w2d = jnp.reshape(conv_weight, (C_OUT, C_IN))
    ref = jnp.einsum("bchw,oc->bohw", x, w2d)     # (B, 32, H, W)
    return jnp.transpose(ref, (0, 2, 1, 3))       # (B, H, 32, W)


if __name__ == "__main__":
    key = jax.random.PRNGKey(0)
    k_x, k_w = jax.random.split(key)

    # torch Conv2d weight shape is (32, 2, 1, 1); build it in that shape.
    conv_weight = jax.random.normal(k_w, (C_OUT, C_IN, 1, 1), dtype=jnp.float32) * (
        1.0 / jnp.sqrt(C_IN)
    )

    # 1) Main small-shape check.
    B, H, W = 2, 16, 16
    x = jax.random.normal(k_x, (B, C_IN, H, W), dtype=jnp.float32)
    out = jax.block_until_ready(attention_forward(x, conv_weight))
    ref = _reference(x, conv_weight)
    assert out.shape == (B, H, C_OUT, W)
    assert jnp.allclose(out, ref, atol=1e-5, rtol=1e-5)

    # 2) H-remainder handling: H not divisible by the H tile (cdiv grid, dropped OOB).
    B2, H2, W2 = 2, 20, 16
    x2 = jax.random.normal(k_x, (B2, C_IN, H2, W2), dtype=jnp.float32)
    out2 = jax.block_until_ready(attention_forward(x2, conv_weight, h_tile=8))
    ref2 = _reference(x2, conv_weight)
    assert out2.shape == (B2, H2, C_OUT, W2)
    assert jnp.allclose(out2, ref2, atol=1e-5, rtol=1e-5)

    # 3) W-tiling path (multiple-of-128 W tiles) incl. a W remainder block.
    B3, H3, W3 = 1, 8, 160
    x3 = jax.random.normal(k_x, (B3, C_IN, H3, W3), dtype=jnp.float32)
    out3 = jax.block_until_ready(attention_forward(x3, conv_weight, h_tile=8, w_tile=128))
    ref3 = _reference(x3, conv_weight)
    assert out3.shape == (B3, H3, C_OUT, W3)
    assert jnp.allclose(out3, ref3, atol=1e-5, rtol=1e-5)

    # TODO(synk): kernel_size is unspecified in the module snippet; if the real location
    # layer uses a wide conv (e.g. kernel_size=31, padded), this kernel needs a
    # sliding-window contraction over W, not a per-position channel projection.
    print("KERNEL_OK")
</pallas_src>

<mosaic_0001>
module attributes {stable_mosaic.version = 11 : i64} {
  func.func @_location_conv_kernel(%arg0: i32, %arg1: i32, %arg2: i32, %arg3: memref<1x2x16x16xf32, #tpu.memory_space<vmem>>, %arg4: memref<32x2xf32, #tpu.memory_space<vmem>>, %arg5: memref<1x16x32x16xf32, #tpu.memory_space<vmem>>) attributes {dimension_semantics = [#tpu.dimension_semantics<parallel>, #tpu.dimension_semantics<parallel>, #tpu.dimension_semantics<parallel>], iteration_bounds = array<i64: 2, 1, 1>, scalar_prefetch = 0 : i64, scratch_operands = 0 : i64, tpu.core_type = #tpu.core_type<tc>, window_params = [{transform_indices = @transform_0, window_bounds = array<i64: 1, 2, 16, 16>}, {pipeline_mode = #tpu.pipeline_mode<synchronous>, transform_indices = @transform_1, window_bounds = array<i64: 32, 2>}, {transform_indices = @transform_2, window_bounds = array<i64: 1, 16, 32, 16>}]} {
    %c0 = arith.constant 0 : index
    %c0_0 = arith.constant 0 : index
    %c0_1 = arith.constant 0 : index
    %c0_2 = arith.constant 0 : index
    %0 = vector.load %arg3[%c0, %c0_0, %c0_1, %c0_2] : memref<1x2x16x16xf32, #tpu.memory_space<vmem>>, vector<1x2x16x16xf32>
    %c0_3 = arith.constant 0 : index
    %c0_4 = arith.constant 0 : index
    %1 = vector.load %arg4[%c0_3, %c0_4] : memref<32x2xf32, #tpu.memory_space<vmem>>, vector<32x2xf32>
    %2 = vector.extract_strided_slice %0 {offsets = [0, 0, 0, 0], sizes = [1, 1, 16, 16], strides = [1, 1, 1, 1]} : vector<1x2x16x16xf32> to vector<1x1x16x16xf32>
    %3 = vector.shape_cast %2 : vector<1x1x16x16xf32> to vector<16x16xf32>
    %4 = vector.extract_strided_slice %0 {offsets = [0, 1, 0, 0], sizes = [1, 1, 16, 16], strides = [1, 1, 1, 1]} : vector<1x2x16x16xf32> to vector<1x1x16x16xf32>
    %5 = vector.shape_cast %4 : vector<1x1x16x16xf32> to vector<16x16xf32>
    %6 = vector.shape_cast %3 : vector<16x16xf32> to vector<16x1x16xf32>
    %7 = vector.extract_strided_slice %1 {offsets = [0, 0], sizes = [32, 1], strides = [1, 1]} : vector<32x2xf32> to vector<32x1xf32>
    %8 = vector.shape_cast %7 : vector<32x1xf32> to vector<1x32x1xf32>
    %9 = vector.broadcast %6 : vector<16x1x16xf32> to vector<16x32x16xf32>
    %10 = vector.broadcast %8 : vector<1x32x1xf32> to vector<16x32x16xf32>
    %11 = arith.mulf %9, %10 : vector<16x32x16xf32>
    %12 = vector.shape_cast %5 : vector<16x16xf32> to vector<16x1x16xf32>
    %13 = vector.extract_strided_slice %1 {offsets = [0, 1], sizes = [32, 1], strides = [1, 1]} : vector<32x2xf32> to vector<32x1xf32>
    %14 = vector.shape_cast %13 : vector<32x1xf32> to vector<1x32x1xf32>
    %15 = vector.broadcast %12 : vector<16x1x16xf32> to vector<16x32x16xf32>
    %16 = vector.broadcast %14 : vector<1x32x1xf32> to vector<16x32x16xf32>
    %17 = arith.mulf %15, %16 : vector<16x32x16xf32>
    %18 = arith.addf %11, %17 : vector<16x32x16xf32>
    %c0_5 = arith.constant 0 : index
    %c0_6 = arith.constant 0 : index
    %c0_7 = arith.constant 0 : index
    %c0_8 = arith.constant 0 : index
    %19 = vector.load %arg5[%c0_5, %c0_6, %c0_7, %c0_8] : memref<1x16x32x16xf32, #tpu.memory_space<vmem>>, vector<1x16x32x16xf32>
    %20 = vector.shape_cast %19 : vector<1x16x32x16xf32> to vector<16x32x16xf32>
    %21 = vector.shape_cast %18 : vector<16x32x16xf32> to vector<1x16x32x16xf32>
    tpu.vector_store %arg5[%c0_5, %c0_6, %c0_7, %c0_8], %21 {strides = array<i32>} : memref<1x16x32x16xf32, #tpu.memory_space<vmem>>, vector<1x16x32x16xf32>,
    return
  }
  func.func @transform_0(%arg0: i32, %arg1: i32, %arg2: i32) -> (i32, i32, i32, i32) {
    %c0_i32 = arith.constant 0 : i32
    %c0_i32_0 = arith.constant 0 : i32
    return %arg0, %c0_i32, %arg1, %arg2 : i32, i32, i32, i32
  }
  func.func @transform_1(%arg0: i32, %arg1: i32, %arg2: i32) -> (i32, i32) {
    %c0_i32 = arith.constant 0 : i32
    %c0_i32_0 = arith.constant 0 : i32
    %c0_i32_1 = arith.constant 0 : i32
    return %c0_i32, %c0_i32_0 : i32, i32
  }
  func.func @transform_2(%arg0: i32, %arg1: i32, %arg2: i32) -> (i32, i32, i32, i32) {
    %c0_i32 = arith.constant 0 : i32
    %c0_i32_0 = arith.constant 0 : i32
    return %arg0, %arg1, %c0_i32, %arg2 : i32, i32, i32, i32
  }
}

</mosaic_0001>

<bundles_post_ra>
// kernel: tpu_custom_call.1
= control target key start
LH: loop header
LB: loop body
LE: loop exit
PB: predicated region body
PF: predicated region fallthrough
CT: control target
= control target key end

     0   :  { %7 = vsyncpa [#allocation3], 0  ;;  %s1493_s0 = inlined_call_operand.hbm [shape: f32[2,2,16,16], index: 0, kind: input, shape index: {}]   ;;  %s1494_s1 = inlined_call_operand.vmem [shape: f32[32,2], index: 1, kind: input, shape index: {}]   ;;  %s1495_s2 = inlined_call_operand.vmem [shape: f32[2,16,32,16], index: 2, kind: output, shape index: {}]  }
   0x1   :  { %9 = vsyncpa [#allocation3 + $0x1], 0  ;;  %s906_s9 = smov 0   ;;  %s908_s10 = smov 0  }
   0x2   :  { %s910_s11 = smov 0   ;;  %s912_s12 = smov 0  }
   0x3   :  { %s914_s13 = smov 0   ;;  %s916_s14 = smov 0  }
   0x4 LB: > { %s726_s15 = sadd.s32 4294967295, %s885_s14   ;;  %s34_s16 = sadd.s32 1, %s881_s13  ;;  %s885_s14 = sphi %s916_s14, %s15_s14   ;;  %s881_s13 = sphi %s914_s13, %s1502_s13   ;;  %s877_s12 = sphi %s912_s12, %s1501_s12   ;;  %s873_s11 = sphi %s910_s11, %s1500_s11   ;;  %s869_s10 = sphi %s908_s10, %s1499_s10   ;;  %s865_s9 = sphi %s906_s9, %s1498_s9  }
   0x5   : > { %p36_p0 = scmp.ge.s32.totalorder %s34_s16, 2  ;;  %s45_s17 = sadd.s32 1, %s873_s11 }
   0x6   : > { %p52_p1 = scmp.ne.s32.totalorder %s873_s11, %s869_s10  ;;  %p53_p2 = scmp.eq.s32.totalorder %s885_s14, 0 }
   0x7   : > { %s1504_s16 = smov (%p36_p0, %s34_s16), 0  ;;  %p58_p4 = scmp.ne.s32.totalorder %s869_s10, %s865_s9 }
   0x8   : > { %p942_p3 = por %p53_p2, %p52_p1  ;;  %s38_s19 = ssub.s32 %s881_s13, %s1504_s16 }
   0x9   : > { %p59_p5 = scmp.eq.s32.totalorder %s726_s15, 0  ;;  %p43_p6 = scmp.eq.s32.totalorder %s38_s19, 0 }
   0xa   : > { %p747_p8 = scmp.lt.s32.totalorder %s885_s14, 2  ;;  %s136_s22 = sand.u32 1, %s873_s11  }
   0xb   : > { %p949_p7 = por %p59_p5, %p58_p4  ;;  %s739_s23 = sshll.u32 %s881_s13, 5 }
   0xc   : > { %s955_s21 = scalar_select %p43_p6, %s873_s11, %s45_s17  }
   0xd   : > { %s730_s24 = sshll.u32 %s136_s22, 5  ;;  %s148_s27 = scalar_lea.hbm %s1493_s0, %s739_s23 }
   0xe   : > { %s149_s28 = sshll.u32 %s148_s27, 4  ;;  %s140_s29 = scalar_lea.vmem [#allocation2], %s730_s24  ;;  %s150_s28 = int_to_ptr.hbm [resolvable:$true] %s149_s28 }
   0xf   : > { %s151_s30 = sshll.u32 %s140_s29, 4  ;;  %p744_p9 = pnand %p747_p8, %p942_p3  ;;  %s152_s30 = int_to_ptr.vmem [resolvable:$true] %s151_s30 }
  0x10   : > { %p733_p10 = scmp.ge.s32.totalorder %s885_s14, 1  ;;  %p159_p11 = scmp.lt.s32.totalorder %s885_s14, 3 }
  0x11   : > { %s137_s3 = scalar_lea.sflag [#allocation3], %s136_s22  ;;  %s887_s4 = smov 128  }
  0x12   : > { %s888_s5 = smov 8   ;;  %p160_p12 = pnand %p733_p10, %p159_p11 }
  0x13   : > { %746 = dma.hbm_to_vmem [thread:$0]  (!%p744_p9), %s150_s28, 512, %s152_s30, %s137_s3, %s887_s4, %s887_s4, %s888_s5  }
  0x14   : > { %163 = sbr.rel (%p160_p12) target bundleno = 212 (0xd4), region = 28  ;;  %s165_s6 = sand.u32 (!%p160_p12), 1, %s869_s10  }
  0x15   : > { %s734_s7 = sshll.u32 (!%p160_p12), %s165_s6, 5  ;;  %s166_s8 = scalar_lea.sflag (!%p160_p12), [#allocation3], %s165_s6 }
  0x16   : > { %s967_s9 = scalar_lea.vmem (!%p160_p12), [#allocation2], %s734_s7 }
  0x19   : > { %860 = dma.done.wait (%p949_p7), %s166_s8, 512  }
  0x1a   : > { %862 = vsyncadd (%p949_p7), %s166_s8, 4294966784  ;;  %v889_v0 = vmov 0   ;;  %v890_v1 = vmov 1   ;;  %v220_v2 = vld [vmem:[%s1494_s1 + $0x10] sm:$0xff]  ;;  %v218_v3 = vld [vmem:[%s1494_s1] sm:$0xff]  ;;  %p201_p13 = scmp.lt.s32.totalorder %s877_s12, 1 }
  0x1b   : > { %801 = vset.pattern.permute.xlu1 %v889_v0  ;;  %800 = vset.pattern.permute.xlu0 %v889_v0  ;;  %v221_v4 = vld [vmem:[%s1494_s1 + $0x18] sm:$0xff]  ;;  %v219_v5 = vld [vmem:[%s1494_s1 + $0x8] sm:$0xff]  ;;  %v214_v6 = vld [vmem:[%s967_s9] sm:$0xff]  ;;  %vm546_vm0 = vcmask 130048  }
  0x1c   : > { %802 = vset.pattern.permute.xlu2 %v890_v1  ;;  %282 = vperm.xlu1 %801, %v220_v2   ;;  %v215_v7 = vld [vmem:[%s967_s9 + $0x8] sm:$0xff]  ;;  %v224_v8 = vrot.slane %v214_v6, 1  ;;  %v225_v9 = vrot.slane %v214_v6, 2  ;;  %v226_v10 = vrot.slane %v214_v6, 3  ;;  %v227_v11 = vrot.slane %v214_v6, 4  ;;  %v216_v17 = vld [vmem:[%s967_s9 + $0x10] sm:$0xff] }
  0x1d   : > { %272 = vperm.xlu0 %800, %v218_v3   ;;  %403 = vperm.xlu2 %802, %v218_v3   ;;  %v228_v12 = vrot.slane %v214_v6, 5  ;;  %v229_v13 = vrot.slane %v214_v6, 6  ;;  %v230_v14 = vrot.slane %v214_v6, 7  ;;  %v231_v15 = vrot.slane %v215_v7, 1  ;;  %v1014_v37 = vld [vmem:[%s967_s9 + $0x18] sm:$0xff]  ;;  %s1506_s12 = smov (!%p201_p13, %s877_s12), 1 }
  0x1e   : > { %v232_v16 = vrot.slane %v215_v7, 2  ;;  %v233_v18 = vrot.slane %v215_v7, 3  ;;  %v234_v19 = vrot.slane %v215_v7, 4  ;;  %v235_v20 = vrot.slane %v215_v7, 5  ;;  %s740_s25 = sshll.u32 %s1506_s12, 9 }
  0x1f   : > { %v236_v21 = vrot.slane %v215_v7, 6  ;;  %v237_v22 = vrot.slane %v215_v7, 7  ;;  %v988_v23 = vperm.slane %v214_v6, 0  ;;  %v990_v24 = vperm.slane %v224_v8, 0  ;;  %s1087_s27 = scalar_lea.vmem %s1495_s2, %s740_s25 }
  0x20   : > { %v992_v25 = vperm.slane %v225_v9, 0  ;;  %v994_v26 = vperm.slane %v226_v10, 0  ;;  %v996_v27 = vperm.slane %v227_v11, 0  ;;  %v998_v28 = vperm.slane %v228_v12, 0 }
  0x21   : > { %v356_v29 = vrot.slane %v216_v17, 1  ;;  %v1000_v30 = vperm.slane %v229_v13, 0  ;;  %v1002_v31 = vperm.slane %v230_v14, 0  ;;  %v1004_v32 = vperm.slane %v215_v7, 0 }
  0x22   : > { %v357_v33 = vrot.slane %v216_v17, 2  ;;  %v1007_v34 = vperm.slane %v231_v15, 0  ;;  %v1009_v35 = vperm.slane %v232_v16, 0  ;;  %v1011_v36 = vperm.slane %v233_v18, 0 }
  0x23   : > { %v358_v38 = vrot.slane %v216_v17, 3  ;;  %v1016_v39 = vperm.slane %v234_v19, 0  ;;  %v1018_v40 = vperm.slane %v235_v20, 0  ;;  %v1020_v41 = vperm.slane %v236_v21, 0 }
  0x24   : > { %287 = vperm.xlu1 %801, %v221_v4   ;;  %v359_v42 = vrot.slane %v216_v17, 4  ;;  %v360_v43 = vrot.slane %v216_v17, 5  ;;  %v361_v44 = vrot.slane %v216_v17, 6  ;;  %v1022_v45 = vperm.slane %v216_v17, 0 }
  0x25   : > { %277 = vperm.xlu0 %800, %v219_v5   ;;  %407 = vperm.xlu2 %802, %v219_v5   ;;  %v1024_v46 = vperm.slane %v356_v29, 0  ;;  %v1028_v48 = vperm.slane %v237_v22, 0  ;;  %v362_v49 = vrot.slane %v216_v17, 7  ;;  %v363_v50 = vrot.slane %v1014_v37, 1 }
  0x26   : > { %v1036_v51 = vperm.slane %v357_v33, 0  ;;  %v364_v52 = vrot.slane %v1014_v37, 2  ;;  %v365_v53 = vrot.slane %v1014_v37, 3  ;;  %v1040_v54 = vperm.slane %v358_v38, 0 }
  0x27   : > { %v366_v55 = vrot.slane %v1014_v37, 4  ;;  %v367_v56 = vrot.slane %v1014_v37, 5  ;;  %v368_v57 = vrot.slane %v1014_v37, 6  ;;  %v1045_v58 = vperm.slane %v359_v42, 0 }
  0x28   : > { %v1049_v60 = vperm.slane %v360_v43, 0  ;;  %v1051_v61 = vperm.slane %v361_v44, 0  ;;  %v369_v5 = vrot.slane %v1014_v37, 7  ;;  %v1069_v6 = vperm.slane %v362_v49, 0 }
  0x29   : > { %v1076_v9 = vperm.slane %v1014_v37, 0  ;;  %v1078_v10 = vperm.slane %v363_v50, 0  ;;  %v1089_v13 = vperm.slane %v364_v52, 0  ;;  %v1099_v21 = vperm.slane %v365_v53, 0 }
  0x2a   : > { %v1105_v37 = vperm.slane %v366_v55, 0  ;;  %v1115_v49 = vperm.slane %v367_v56, 0  ;;  %v1123_v55 = vperm.slane %v368_v57, 0 }
  0x2c   : > { %804 = vset.pattern.permute.xlu1 %v890_v1 }
  0x2d   : > { %803 = vset.pattern.permute.xlu0 %v890_v1  ;;  %415 = vperm.xlu1 %804, %v221_v4  }
  0x2e   : > { %411 = vperm.xlu0 %803, %v220_v2  }
  0x77   : > { %v1026_v47 = vpop.permute.xlu2 %403 }
  0x78   : > { %v418_v62 = vmul.f32 %v1026_v47, %v1022_v45  ;;  %v422_v63 = vmul.f32 %v1026_v47, %v1024_v46  ;;  %v426_v3 = vmul.f32 %v1026_v47, %v1036_v51  ;;  %v430_v7 = vmul.f32 %v1026_v47, %v1040_v54 }
  0x79   : > { %v434_v11 = vmul.f32 %v1026_v47, %v1045_v58  ;;  %v438_v14 = vmul.f32 %v1026_v47, %v1049_v60  ;;  %v442_v15 = vmul.f32 %v1026_v47, %v1051_v61  ;;  %v446_v22 = vmul.f32 %v1026_v47, %v1069_v6 }
  0x7a   : > { %v450_v38 = vmul.f32 %v1026_v47, %v1076_v9  ;;  %v454_v50 = vmul.f32 %v1026_v47, %v1078_v10 }
  0x8e   : > { %v1111_v43 = vpop.permute.xlu1 %282 }
  0x8f   : > { %v1047_v59 = vpop.permute.xlu0 %272 }
  0x90   : > { %v290_v0 = vmul.f32 %v1047_v59, %v988_v23  ;;  %v294_v1 = vmul.f32 %v1047_v59, %v990_v24  ;;  %v298_v2 = vmul.f32 %v1047_v59, %v992_v25  ;;  %v302_v4 = vmul.f32 %v1047_v59, %v994_v26 }
  0x91   : > { %v306_v8 = vmul.f32 %v1047_v59, %v996_v27  ;;  %v310_v12 = vmul.f32 %v1047_v59, %v998_v28  ;;  %v314_v16 = vmul.f32 %v1047_v59, %v1000_v30  ;;  %v318_v20 = vmul.f32 %v1047_v59, %v1002_v31 }
  0x92   : > { %v482_v17 = vadd.f32 %v418_v62, %v290_v0  ;;  %v486_v18 = vadd.f32 %v422_v63, %v294_v1  ;;  %v490_v19 = vadd.f32 %v426_v3, %v298_v2  ;;  %v494_v29 = vadd.f32 %v430_v7, %v302_v4  ;;  %v1145_v7 = vpop.permute.xlu2 %407 }
  0x93   : > { %v322_v33 = vmul.f32 %v1047_v59, %v1004_v32  ;;  %v498_v42 = vadd.f32 %v434_v11, %v306_v8  ;;  %v326_v44 = vmul.f32 %v1047_v59, %v1007_v34  ;;  %v502_v52 = vadd.f32 %v438_v14, %v310_v12 }
  0x94   : > { %547 = vst.msk [vmem:[%s1087_s27] sm:$0xff] %vm546_vm0, %v482_v17  ;;  %v330_v53 = vmul.f32 %v1047_v59, %v1009_v35  ;;  %v458_v62 = vmul.f32 %v1026_v47, %v1089_v13  ;;  %v506_v63 = vadd.f32 %v442_v15, %v314_v16  ;;  %v334_v56 = vmul.f32 %v1047_v59, %v1011_v36 }
  0x95   : > { %551 = vst.msk [vmem:[%s1087_s27 + $0x20] sm:$0xff] %vm546_vm0, %v486_v18  ;;  %v1131_v0 = vperm.slane %v369_v5, 0  ;;  %v462_v1 = vmul.f32 %v1026_v47, %v1099_v21  ;;  %v510_v2 = vadd.f32 %v446_v22, %v318_v20  ;;  %v338_v57 = vmul.f32 %v1047_v59, %v1016_v39 }
  0x96   : > { %555 = vst.msk [vmem:[%s1087_s27 + $0x40] sm:$0xff] %vm546_vm0, %v490_v19  ;;  %v466_v3 = vmul.f32 %v1026_v47, %v1105_v37  ;;  %v514_v4 = vadd.f32 %v450_v38, %v322_v33  ;;  %v342_v5 = vmul.f32 %v1047_v59, %v1018_v40  ;;  %v470_v8 = vmul.f32 %v1026_v47, %v1115_v49 }
  0x97   : > { %559 = vst.msk [vmem:[%s1087_s27 + $0x60] sm:$0xff] %vm546_vm0, %v494_v29  ;;  %v518_v11 = vadd.f32 %v454_v50, %v326_v44  ;;  %v1151_v12 = vpop.permute.xlu0 %277  ;;  %v346_v14 = vmul.f32 %v1047_v59, %v1020_v41  ;;  %v474_v15 = vmul.f32 %v1026_v47, %v1123_v55  ;;  %v522_v16 = vadd.f32 %v458_v62, %v330_v53  ;;  %v1183_v50 = vpop.permute.xlu1 %287 }
  0x98   : > { %563 = vst.msk [vmem:[%s1087_s27 + $0x80] sm:$0xff] %vm546_vm0, %v498_v42  ;;  %v350_v17 = vmul.f32 %v1047_v59, %v1028_v48  ;;  %v478_v18 = vmul.f32 %v1026_v47, %v1131_v0  ;;  %v526_v19 = vadd.f32 %v462_v1, %v334_v56  ;;  %v419_v20 = vmul.f32 %v1145_v7, %v1022_v45 }
  0x99   : > { %567 = vst.msk [vmem:[%s1087_s27 + $0xa0] sm:$0xff] %vm546_vm0, %v502_v52  ;;  %v530_v22 = vadd.f32 %v466_v3, %v338_v57  ;;  %v291_v29 = vmul.f32 %v1151_v12, %v988_v23  ;;  %v423_v59 = vmul.f32 %v1145_v7, %v1024_v46  ;;  %v534_v33 = vadd.f32 %v470_v8, %v342_v5 }
  0x9a   : > { %571 = vst.msk [vmem:[%s1087_s27 + $0xc0] sm:$0xff] %vm546_vm0, %v506_v63  ;;  %v295_v47 = vmul.f32 %v1151_v12, %v990_v24  ;;  %v427_v38 = vmul.f32 %v1145_v7, %v1036_v51  ;;  %v538_v42 = vadd.f32 %v474_v15, %v346_v14  ;;  %v299_v44 = vmul.f32 %v1151_v12, %v992_v25 }
  0x9b   : > { %575 = vst.msk [vmem:[%s1087_s27 + $0xe0] sm:$0xff] %vm546_vm0, %v510_v2  ;;  %v431_v52 = vmul.f32 %v1145_v7, %v1040_v54  ;;  %v542_v53 = vadd.f32 %v478_v18, %v350_v17  ;;  %v303_v62 = vmul.f32 %v1151_v12, %v994_v26  ;;  %v435_v63 = vmul.f32 %v1145_v7, %v1045_v58 }
  0x9c   : > { %579 = vst.msk [vmem:[%s1087_s27 + $0x100] sm:$0xff] %vm546_vm0, %v514_v4  ;;  %v307_v56 = vmul.f32 %v1151_v12, %v996_v27  ;;  %v483_v1 = vadd.f32 %v419_v20, %v291_v29  ;;  %v439_v2 = vmul.f32 %v1145_v7, %v1049_v60  ;;  %v311_v57 = vmul.f32 %v1151_v12, %v998_v28 }
  0x9d   : > { %583 = vst.msk [vmem:[%s1087_s27 + $0x120] sm:$0xff] %vm546_vm0, %v518_v11  ;;  %v487_v3 = vadd.f32 %v423_v59, %v295_v47  ;;  %v443_v4 = vmul.f32 %v1145_v7, %v1051_v61  ;;  %v315_v5 = vmul.f32 %v1151_v12, %v1000_v30  ;;  %v491_v8 = vadd.f32 %v427_v38, %v299_v44 }
  0x9e   : > { %587 = vst.msk [vmem:[%s1087_s27 + $0x140] sm:$0xff] %vm546_vm0, %v522_v16  ;;  %v447_v11 = vmul.f32 %v1145_v7, %v1069_v6  ;;  %v319_v14 = vmul.f32 %v1151_v12, %v1002_v31  ;;  %v495_v15 = vadd.f32 %v431_v52, %v303_v62  ;;  %v451_v16 = vmul.f32 %v1145_v7, %v1076_v9 }
  0x9f   : > { %591 = vst.msk [vmem:[%s1087_s27 + $0x160] sm:$0xff] %vm546_vm0, %v526_v19  ;;  %v323_v17 = vmul.f32 %v1151_v12, %v1004_v32  ;;  %v499_v18 = vadd.f32 %v435_v63, %v307_v56  ;;  %v455_v19 = vmul.f32 %v1145_v7, %v1078_v10  ;;  %v327_v20 = vmul.f32 %v1151_v12, %v1007_v34 }
  0xa0   : > { %595 = vst.msk [vmem:[%s1087_s27 + $0x180] sm:$0xff] %vm546_vm0, %v530_v22  ;;  %v503_v22 = vadd.f32 %v439_v2, %v311_v57  ;;  %v459_v29 = vmul.f32 %v1145_v7, %v1089_v13  ;;  %v331_v59 = vmul.f32 %v1151_v12, %v1009_v35  ;;  %v463_v47 = vmul.f32 %v1145_v7, %v1099_v21 }
  0xa1   : > { %599 = vst.msk [vmem:[%s1087_s27 + $0x1a0] sm:$0xff] %vm546_vm0, %v534_v33  ;;  %v507_v33 = vadd.f32 %v443_v4, %v315_v5  ;;  %v335_v38 = vmul.f32 %v1151_v12, %v1011_v36  ;;  %v467_v44 = vmul.f32 %v1145_v7, %v1105_v37  ;;  %v339_v52 = vmul.f32 %v1151_v12, %v1016_v39 }
  0xa2   : > { %603 = vst.msk [vmem:[%s1087_s27 + $0x1c0] sm:$0xff] %vm546_vm0, %v538_v42  ;;  %v511_v42 = vadd.f32 %v447_v11, %v319_v14  ;;  %v471_v62 = vmul.f32 %v1145_v7, %v1115_v49  ;;  %v343_v63 = vmul.f32 %v1151_v12, %v1018_v40  ;;  %v519_v56 = vadd.f32 %v455_v19, %v327_v20 }
  0xa3   : > { %607 = vst.msk [vmem:[%s1087_s27 + $0x1e0] sm:$0xff] %vm546_vm0, %v542_v53  ;;  %v515_v53 = vadd.f32 %v451_v16, %v323_v17  ;;  %v475_v2 = vmul.f32 %v1145_v7, %v1123_v55  ;;  %v347_v57 = vmul.f32 %v1151_v12, %v1020_v41  ;;  %v479_v4 = vmul.f32 %v1145_v7, %v1131_v0 }
  0xa4   : > { %548 = vst.msk [vmem:[%s1087_s27 + $0x8] sm:$0xff] %vm546_vm0, %v483_v1  ;;  %v1251_v1 = vpop.permute.xlu1 %415  ;;  %v351_v5 = vmul.f32 %v1151_v12, %v1028_v48  ;;  %v531_v11 = vadd.f32 %v467_v44, %v339_v52  ;;  %v293_v12 = vmul.f32 %v1183_v50, %v988_v23  ;;  %v297_v19 = vmul.f32 %v1183_v50, %v990_v24 }
  0xa5   : > { %552 = vst.msk [vmem:[%s1087_s27 + $0x28] sm:$0xff] %vm546_vm0, %v487_v3  ;;  %v523_v3 = vadd.f32 %v459_v29, %v331_v59  ;;  %v421_v14 = vmul.f32 %v1251_v1, %v1022_v45  ;;  %v425_v7 = vmul.f32 %v1251_v1, %v1024_v46  ;;  %v539_v16 = vadd.f32 %v475_v2, %v347_v57 }
  0xa6   : > { %556 = vst.msk [vmem:[%s1087_s27 + $0x48] sm:$0xff] %vm546_vm0, %v491_v8  ;;  %v527_v8 = vadd.f32 %v463_v47, %v335_v38  ;;  %v429_v17 = vmul.f32 %v1251_v1, %v1036_v51  ;;  %v433_v20 = vmul.f32 %v1251_v1, %v1040_v54  ;;  %v437_v29 = vmul.f32 %v1251_v1, %v1045_v58 }
  0xa7   : > { %560 = vst.msk [vmem:[%s1087_s27 + $0x68] sm:$0xff] %vm546_vm0, %v495_v15  ;;  %v535_v15 = vadd.f32 %v471_v62, %v343_v63  ;;  %v485_v59 = vadd.f32 %v421_v14, %v293_v12  ;;  %v441_v47 = vmul.f32 %v1251_v1, %v1049_v60  ;;  %v489_v38 = vadd.f32 %v425_v7, %v297_v19 }
  0xa8   : > { %564 = vst.msk [vmem:[%s1087_s27 + $0x88] sm:$0xff] %vm546_vm0, %v499_v18  ;;  %v543_v18 = vadd.f32 %v479_v4, %v351_v5  ;;  %v445_v44 = vmul.f32 %v1251_v1, %v1051_v61  ;;  %v449_v62 = vmul.f32 %v1251_v1, %v1069_v6  ;;  %v453_v2 = vmul.f32 %v1251_v1, %v1076_v9 }
  0xa9   : > { %568 = vst.msk [vmem:[%s1087_s27 + $0xa8] sm:$0xff] %vm546_vm0, %v503_v22  ;;  %v301_v22 = vmul.f32 %v1183_v50, %v992_v25  ;;  %v457_v4 = vmul.f32 %v1251_v1, %v1078_v10  ;;  %v465_v7 = vmul.f32 %v1251_v1, %v1099_v21  ;;  %v333_v12 = vmul.f32 %v1183_v50, %v1009_v35 }
  0xaa   : > { %572 = vst.msk [vmem:[%s1087_s27 + $0xc8] sm:$0xff] %vm546_vm0, %v507_v33  ;;  %v305_v33 = vmul.f32 %v1183_v50, %v994_v26  ;;  %v337_v19 = vmul.f32 %v1183_v50, %v1011_v36 }
  0xab   : > { %576 = vst.msk [vmem:[%s1087_s27 + $0xe8] sm:$0xff] %vm546_vm0, %v511_v42  ;;  %v309_v42 = vmul.f32 %v1183_v50, %v996_v27  ;;  %v493_v52 = vadd.f32 %v429_v17, %v301_v22  ;;  %v469_v17 = vmul.f32 %v1251_v1, %v1105_v37 }
  0xac   : > { %580 = vst.msk [vmem:[%s1087_s27 + $0x108] sm:$0xff] %vm546_vm0, %v515_v53  ;;  %v313_v53 = vmul.f32 %v1183_v50, %v998_v28  ;;  %v497_v63 = vadd.f32 %v433_v20, %v305_v33  ;;  %v473_v20 = vmul.f32 %v1251_v1, %v1115_v49  ;;  %v477_v33 = vmul.f32 %v1251_v1, %v1123_v55 }
  0xad   : > { %584 = vst.msk [vmem:[%s1087_s27 + $0x128] sm:$0xff] %vm546_vm0, %v519_v56  ;;  %v317_v56 = vmul.f32 %v1183_v50, %v1000_v30  ;;  %v501_v57 = vadd.f32 %v437_v29, %v309_v42  ;;  %v1345_v29 = vpop.permute.xlu0 %411  ;;  %v481_v42 = vmul.f32 %v1251_v1, %v1131_v0 }
  0xae   : > { %588 = vst.msk [vmem:[%s1087_s27 + $0x148] sm:$0xff] %vm546_vm0, %v523_v3  ;;  %v321_v3 = vmul.f32 %v1183_v50, %v1002_v31  ;;  %v505_v5 = vadd.f32 %v441_v47, %v313_v53 }
  0xaf   : > { %592 = vst.msk [vmem:[%s1087_s27 + $0x168] sm:$0xff] %vm546_vm0, %v527_v8  ;;  %v325_v8 = vmul.f32 %v1183_v50, %v1004_v32  ;;  %v509_v14 = vadd.f32 %v445_v44, %v317_v56  ;;  %v529_v44 = vadd.f32 %v465_v7, %v337_v19 }
  0xb0   : > { %596 = vst.msk [vmem:[%s1087_s27 + $0x188] sm:$0xff] %vm546_vm0, %v531_v11  ;;  %v461_v11 = vmul.f32 %v1251_v1, %v1089_v13  ;;  %v424_v1 = vmul.f32 %v1345_v29, %v1024_v46  ;;  %v432_v46 = vmul.f32 %v1345_v29, %v1040_v54  ;;  %v444_v54 = vmul.f32 %v1345_v29, %v1051_v61 }
  0xb1   : > { %600 = vst.msk [vmem:[%s1087_s27 + $0x1a8] sm:$0xff] %vm546_vm0, %v535_v15  ;;  %v329_v15 = vmul.f32 %v1183_v50, %v1007_v34  ;;  %v320_v61 = vmul.f32 %v1111_v43, %v1002_v31  ;;  %v328_v31 = vmul.f32 %v1111_v43, %v1007_v34  ;;  %v336_v34 = vmul.f32 %v1111_v43, %v1011_v36 }
  0xb2   : > { %604 = vst.msk [vmem:[%s1087_s27 + $0x1c8] sm:$0xff] %vm546_vm0, %v539_v16  ;;  %v513_v16 = vadd.f32 %v449_v62, %v321_v3  ;;  %v525_v47 = vadd.f32 %v461_v11, %v333_v12  ;;  %v420_v62 = vmul.f32 %v1345_v29, %v1022_v45  ;;  %v428_v45 = vmul.f32 %v1345_v29, %v1036_v51 }
  0xb3   : > { %608 = vst.msk [vmem:[%s1087_s27 + $0x1e8] sm:$0xff] %vm546_vm0, %v543_v18  ;;  %v517_v18 = vadd.f32 %v453_v2, %v325_v8  ;;  %v521_v22 = vadd.f32 %v457_v4, %v329_v15  ;;  %v300_v4 = vmul.f32 %v1111_v43, %v992_v25  ;;  %v304_v51 = vmul.f32 %v1111_v43, %v994_v26 }
  0xb4   : > { %550 = vst.msk [vmem:[%s1087_s27 + $0x18] sm:$0xff] %vm546_vm0, %v485_v59  ;;  %v341_v59 = vmul.f32 %v1183_v50, %v1016_v39  ;;  %v308_v25 = vmul.f32 %v1111_v43, %v996_v27  ;;  %v312_v26 = vmul.f32 %v1111_v43, %v998_v28  ;;  %v452_v27 = vmul.f32 %v1345_v29, %v1076_v9 }
  0xb5   : > { %554 = vst.msk [vmem:[%s1087_s27 + $0x38] sm:$0xff] %vm546_vm0, %v489_v38  ;;  %v345_v38 = vmul.f32 %v1183_v50, %v1018_v40  ;;  %v496_v11 = vadd.f32 %v432_v46, %v304_v51  ;;  %v456_v28 = vmul.f32 %v1345_v29, %v1078_v10  ;;  %v464_v10 = vmul.f32 %v1345_v29, %v1099_v21 }
  0xb6   : > { %558 = vst.msk [vmem:[%s1087_s27 + $0x58] sm:$0xff] %vm546_vm0, %v493_v52  ;;  %v349_v52 = vmul.f32 %v1183_v50, %v1020_v41  ;;  %v533_v53 = vadd.f32 %v469_v17, %v341_v59  ;;  %v472_v21 = vmul.f32 %v1345_v29, %v1115_v49  ;;  %v344_v36 = vmul.f32 %v1111_v43, %v1018_v40 }
  0xb7   : > { %562 = vst.msk [vmem:[%s1087_s27 + $0x78] sm:$0xff] %vm546_vm0, %v497_v63  ;;  %v353_v63 = vmul.f32 %v1183_v50, %v1028_v48  ;;  %v537_v56 = vadd.f32 %v473_v20, %v345_v38  ;;  %v296_v50 = vmul.f32 %v1111_v43, %v990_v24  ;;  %v440_v24 = vmul.f32 %v1345_v29, %v1049_v60 }
  0xb8   : > { %566 = vst.msk [vmem:[%s1087_s27 + $0x98] sm:$0xff] %vm546_vm0, %v501_v57  ;;  %v541_v2 = vadd.f32 %v477_v33, %v349_v52  ;;  %v292_v57 = vmul.f32 %v1111_v43, %v988_v23  ;;  %v436_v23 = vmul.f32 %v1345_v29, %v1045_v58  ;;  %v492_v58 = vadd.f32 %v428_v45, %v300_v4 }
  0xb9   : > { %570 = vst.msk [vmem:[%s1087_s27 + $0xb8] sm:$0xff] %vm546_vm0, %v505_v5  ;;  %v545_v3 = vadd.f32 %v481_v42, %v353_v63  ;;  %v488_v8 = vadd.f32 %v424_v1, %v296_v50  ;;  %v448_v60 = vmul.f32 %v1345_v29, %v1069_v6  ;;  %v504_v7 = vadd.f32 %v440_v24, %v312_v26 }
  0xba   : > { %574 = vst.msk [vmem:[%s1087_s27 + $0xd8] sm:$0xff] %vm546_vm0, %v509_v14  ;;  %v484_v5 = vadd.f32 %v420_v62, %v292_v57  ;;  %v316_v14 = vmul.f32 %v1111_v43, %v1000_v30  ;;  %v500_v15 = vadd.f32 %v436_v23, %v308_v25  ;;  %v324_v30 = vmul.f32 %v1111_v43, %v1004_v32 }
  0xbb   : > { %578 = vst.msk [vmem:[%s1087_s27 + $0xf8] sm:$0xff] %vm546_vm0, %v513_v16  ;;  %v460_v6 = vmul.f32 %v1345_v29, %v1089_v13  ;;  %v512_v16 = vadd.f32 %v448_v60, %v320_v61  ;;  %v332_v32 = vmul.f32 %v1111_v43, %v1009_v35  ;;  %v468_v13 = vmul.f32 %v1345_v29, %v1105_v37 }
  0xbc   : > { %582 = vst.msk [vmem:[%s1087_s27 + $0x118] sm:$0xff] %vm546_vm0, %v517_v18  ;;  %v508_v9 = vadd.f32 %v444_v54, %v316_v14  ;;  %v516_v12 = vadd.f32 %v452_v27, %v324_v30  ;;  %v520_v17 = vadd.f32 %v456_v28, %v328_v31  ;;  %v340_v35 = vmul.f32 %v1111_v43, %v1016_v39 }
  0xbd   : > { %586 = vst.msk [vmem:[%s1087_s27 + $0x138] sm:$0xff] %vm546_vm0, %v521_v22  ;;  %v476_v37 = vmul.f32 %v1345_v29, %v1123_v55  ;;  %v524_v18 = vadd.f32 %v460_v6, %v332_v32  ;;  %v480_v49 = vmul.f32 %v1345_v29, %v1131_v0  ;;  %v528_v19 = vadd.f32 %v464_v10, %v336_v34 }
  0xbe   : > { %590 = vst.msk [vmem:[%s1087_s27 + $0x158] sm:$0xff] %vm546_vm0, %v525_v47  ;;  %v348_v39 = vmul.f32 %v1111_v43, %v1020_v41  ;;  %v532_v55 = vadd.f32 %v468_v13, %v340_v35  ;;  %v352_v20 = vmul.f32 %v1111_v43, %v1028_v48  ;;  %v536_v22 = vadd.f32 %v472_v21, %v344_v36 }
  0xbf   : > { %594 = vst.msk [vmem:[%s1087_s27 + $0x178] sm:$0xff] %vm546_vm0, %v529_v44 }
  0xc0   : > { %598 = vst.msk [vmem:[%s1087_s27 + $0x198] sm:$0xff] %vm546_vm0, %v533_v53  ;;  %v540_v40 = vadd.f32 %v476_v37, %v348_v39  ;;  %v544_v0 = vadd.f32 %v480_v49, %v352_v20 }
  0xc1   : > { %602 = vst.msk [vmem:[%s1087_s27 + $0x1b8] sm:$0xff] %vm546_vm0, %v537_v56 }
  0xc2   : > { %606 = vst.msk [vmem:[%s1087_s27 + $0x1d8] sm:$0xff] %vm546_vm0, %v541_v2 }
  0xc3   : > { %610 = vst.msk [vmem:[%s1087_s27 + $0x1f8] sm:$0xff] %vm546_vm0, %v545_v3 }
  0xc4   : > { %549 = vst.msk [vmem:[%s1087_s27 + $0x10] sm:$0xff] %vm546_vm0, %v484_v5 }
  0xc5   : > { %553 = vst.msk [vmem:[%s1087_s27 + $0x30] sm:$0xff] %vm546_vm0, %v488_v8 }
  0xc6   : > { %557 = vst.msk [vmem:[%s1087_s27 + $0x50] sm:$0xff] %vm546_vm0, %v492_v58 }
  0xc7   : > { %561 = vst.msk [vmem:[%s1087_s27 + $0x70] sm:$0xff] %vm546_vm0, %v496_v11 }
  0xc8   : > { %565 = vst.msk [vmem:[%s1087_s27 + $0x90] sm:$0xff] %vm546_vm0, %v500_v15 }
  0xc9   : > { %569 = vst.msk [vmem:[%s1087_s27 + $0xb0] sm:$0xff] %vm546_vm0, %v504_v7 }
  0xca   : > { %573 = vst.msk [vmem:[%s1087_s27 + $0xd0] sm:$0xff] %vm546_vm0, %v508_v9 }
  0xcb   : > { %577 = vst.msk [vmem:[%s1087_s27 + $0xf0] sm:$0xff] %vm546_vm0, %v512_v16 }
  0xcc   : > { %581 = vst.msk [vmem:[%s1087_s27 + $0x110] sm:$0xff] %vm546_vm0, %v516_v12 }
  0xcd   : > { %585 = vst.msk [vmem:[%s1087_s27 + $0x130] sm:$0xff] %vm546_vm0, %v520_v17 }
  0xce   : > { %589 = vst.msk [vmem:[%s1087_s27 + $0x150] sm:$0xff] %vm546_vm0, %v524_v18 }
  0xcf   : > { %593 = vst.msk [vmem:[%s1087_s27 + $0x170] sm:$0xff] %vm546_vm0, %v528_v19 }
  0xd0   : > { %597 = vst.msk [vmem:[%s1087_s27 + $0x190] sm:$0xff] %vm546_vm0, %v532_v55 }
  0xd1   : > { %601 = vst.msk [vmem:[%s1087_s27 + $0x1b0] sm:$0xff] %vm546_vm0, %v536_v22 }
  0xd2   : > { %605 = vst.msk [vmem:[%s1087_s27 + $0x1d0] sm:$0xff] %vm546_vm0, %v540_v40 }
  0xd3   : > { %609 = vst.msk [vmem:[%s1087_s27 + $0x1f0] sm:$0xff] %vm546_vm0, %v544_v0 }
  0xd4 PF: > { %s15_s14 = sadd.s32 1, %s885_s14   ;;  %s1498_s9 = smov %s869_s10 }
  0xd5   : > { %p12_p0 = scmp.ge.s32.totalorder %s15_s14, 4   ;;  %s1499_s10 = smov %s873_s11 }
  0xd6   : > { %s1500_s11 = smov %s955_s21  ;;  %s1501_s12 = smov %s881_s13 }
  0xd7   : > { %s1502_s13 = smov %s1504_s16  ;;  %14 = sbr.rel (!%p12_p0) target bundleno = 4 (0x4), region = 68 }
  0xdc   :  { %649 = vsyncpa [#allocation3], 1 }
  0xdd   :  { %651 = vsyncpa [#allocation3 + $0x1], 1 }

</bundles_post_ra>
